<compile_context>
chip_gen: v5e
topology: v5e:2x2
jax: 0.10.0
libtpu: 0.0.40
codegen_flags: <defaults>
</compile_context>

<pallas_src>
import jax
import jax.numpy as jnp
from jax.experimental import pallas as pl
from jax.experimental.pallas import tpu as pltpu


_LANES = 128
_TARGET_BLOCK_ROWS = 2048   # 2048 x 128 f32 = 1 MiB per block
# TODO(synk): re-benchmark this cutover per TPU generation; below it a fused
# XLA elementwise op (single read+write) beats a pallas_call launch.
_MIN_PALLAS_N = 1024


# ---------------------------------------------------------------------------
# Pallas kernel: FHN vector field on a lane-dense interleaved [TR, 128] tile.
# Even lanes hold V, odd lanes hold R (flat index 2i -> V_i, 2i+1 -> R_i).
# ---------------------------------------------------------------------------
def _fhn_interleaved_kernel(theta_ref, x_ref, o_ref):
    # theta in SMEM: (a, b, c). Scalars broadcast into the vector ops.
    a = theta_ref[0]
    b = theta_ref[1]
    c = theta_ref[2]
    neg_inv_c = -1.0 / c

    x = x_ref[...]                          # [TR, 128]: even lanes V, odd lanes R

    # Lane-pair partners via XLU rotations (np.roll semantics):
    #   roll(x, 1)[., l]   = x[., l-1]  -> V partner (valid at odd lanes)
    #   roll(x, 127)[., l] = x[., l+1]  -> R partner (valid at even lanes)
    v_for_r = pltpu.roll(x, 1, 1)
    r_for_v = pltpu.roll(x, 127, 1)

    dV = c * (x - (x * x * x) * (1.0 / 3.0) + r_for_v)   # valid at even lanes
    dR = neg_inv_c * (v_for_r - a + b * x)               # valid at odd lanes

    lane = jax.lax.broadcasted_iota(jnp.int32, x.shape, 1)
    o_ref[...] = jnp.where((lane & 1) == 0, dV, dR)      # single full-tile store


def _fhn_jnp(theta, x):
    """Plain-JAX FHN vector field (reference / small-N fast path). x: [N, 2]."""
    a, b, c = theta[0], theta[1], theta[2]
    V = x[:, 0:1]
    R = x[:, 1:2]
    dV = c * (V - (V * V * V) * (1.0 / 3.0) + R)
    dR = -(1.0 / c) * (V - a + b * R)
    return jnp.concatenate([dV, dR], axis=-1)


def _choose_block_rows(m_rows):
    """~1 MiB blocks at large sizes; otherwise split into >=2 grid steps."""
    half = pl.cdiv(pl.cdiv(m_rows, 2), 8) * 8
    return max(8, min(_TARGET_BLOCK_ROWS, half))


def fode_pallas(theta, x):
    """fOde(theta, x) for x of shape [N, 2]; returns [N, 2]."""
    n, d = x.shape
    if d != 2 or n < _MIN_PALLAS_N:
        # Tiny/odd inputs: a pallas_call is pure launch overhead here.
        return _fhn_jnp(theta, x)

    total = n * d
    x_flat = jnp.reshape(x, (-1,))              # free: row-major bitcast
    m_rows = pl.cdiv(total, _LANES)
    padded = m_rows * _LANES
    if padded != total:
        # Only when 2N is not a multiple of 128 do we pay an extra HBM pass;
        # ragged *rows* in the grid dimension are masked by Pallas for free.
        x_flat = jnp.pad(x_flat, (0, padded - total))
    x2d = jnp.reshape(x_flat, (m_rows, _LANES))  # free: row-major bitcast

    tr = _choose_block_rows(m_rows)
    grid = (pl.cdiv(m_rows, tr),)

    out2d = pl.pallas_call(
        _fhn_interleaved_kernel,
        out_shape=jax.ShapeDtypeStruct((m_rows, _LANES), x.dtype),
        grid_spec=pltpu.PrefetchScalarGridSpec(
            num_scalar_prefetch=0,
            grid=grid,
            in_specs=[
                pl.BlockSpec(memory_space=pltpu.MemorySpace.SMEM),   # theta
                pl.BlockSpec((tr, _LANES), lambda i: (i, 0)),        # x tile
            ],
            out_specs=pl.BlockSpec((tr, _LANES), lambda i: (i, 0)),
        ),
        compiler_params=pltpu.CompilerParams(
            # Independent tiles: shards across both TCs on v7x; no-op v5e/v6e.
            dimension_semantics=("parallel",),
        ),
        cost_estimate=pl.CostEstimate(
            flops=12 * m_rows * _LANES,
            transcendentals=0,
            bytes_accessed=2 * 4 * m_rows * _LANES,   # one read + one write, f32
        ),
    )(theta, x2d)

    out_flat = jnp.reshape(out2d, (-1,))
    if padded != total:
        out_flat = out_flat[:total]
    return jnp.reshape(out_flat, (n, d))


class OdeModule:
    """JAX/Pallas equivalent of the PyTorch odeModule forward pass."""

    def __init__(self, fOde, theta):
        self.f = fOde
        # TODO(synk): PyTorch stores theta as a float64 nn.Parameter; TPU path
        # keeps a plain float32 array (no trainable-parameter machinery).
        self.theta = jnp.asarray(theta, dtype=jnp.float32)

    def __call__(self, x):
        x = jnp.asarray(x, dtype=jnp.float32)
        if x.ndim == 1:
            x = jnp.reshape(x, (1, -1))
        return self.f(self.theta, x)


if __name__ == "__main__":
    theta = jnp.array([0.2, 0.2, 3.0], dtype=jnp.float32)   # (a, b, c)
    module = OdeModule(fode_pallas, theta)

    # 1) Aligned batched path: 2N % 128 == 0 -> zero-copy reshapes, 2 grid steps.
    N1, D = 4096, 2
    x1 = jax.random.normal(jax.random.PRNGKey(0), (N1, D), dtype=jnp.float32)
    out1 = jax.block_until_ready(module(x1))
    ref1 = _fhn_jnp(theta, x1)
    assert out1.shape == (N1, D)
    assert jnp.allclose(out1, ref1, atol=1e-5, rtol=1e-5)

    # 2) Unaligned batched path: pad + ragged last grid block.
    N2 = 1300
    x2 = jax.random.normal(jax.random.PRNGKey(1), (N2, D), dtype=jnp.float32)
    out2 = jax.block_until_ready(module(x2))
    ref2 = _fhn_jnp(theta, x2)
    assert out2.shape == (N2, D)
    assert jnp.allclose(out2, ref2, atol=1e-5, rtol=1e-5)

    # 3) Small trajectory (typical single-RHS call): plain-JAX fast path.
    N3 = 8
    x3 = jax.random.normal(jax.random.PRNGKey(2), (N3, D), dtype=jnp.float32)
    out3 = jax.block_until_ready(module(x3))
    ref3 = _fhn_jnp(theta, x3)
    assert out3.shape == (N3, D)
    assert jnp.allclose(out3, ref3, atol=1e-5, rtol=1e-5)

    # 4) 1-D input path (reshape to (1, -1)), as in the PyTorch module.
    out1d = jax.block_until_ready(module(x3[0]))
    assert out1d.shape == (1, D)
    assert jnp.allclose(out1d, ref3[0:1], atol=1e-5, rtol=1e-5)

    print("KERNEL_OK")
</pallas_src>

<mosaic_0001>
module attributes {stable_mosaic.version = 11 : i64} {
  func.func @_fhn_interleaved_kernel(%arg0: i32, %arg1: memref<3xf32, #tpu.memory_space<smem>>, %arg2: memref<32x128xf32, #tpu.memory_space<vmem>>, %arg3: memref<32x128xf32, #tpu.memory_space<vmem>>) attributes {dimension_semantics = [#tpu.dimension_semantics<parallel>], iteration_bounds = array<i64: 2>, scalar_prefetch = 0 : i64, scratch_operands = 0 : i64, tpu.core_type = #tpu.core_type<tc>, window_params = [{transform_indices = @transform_0, window_bounds = array<i64: 3>}, {transform_indices = @transform_1, window_bounds = array<i64: 32, 128>}, {transform_indices = @transform_2, window_bounds = array<i64: 32, 128>}]} {
    %c0 = arith.constant 0 : index
    %0 = memref.load %arg1[%c0] : memref<3xf32, #tpu.memory_space<smem>>
    %c1 = arith.constant 1 : index
    %1 = memref.load %arg1[%c1] : memref<3xf32, #tpu.memory_space<smem>>
    %c2 = arith.constant 2 : index
    %2 = memref.load %arg1[%c2] : memref<3xf32, #tpu.memory_space<smem>>
    %cst = arith.constant -1.000000e+00 : f32
    %3 = arith.divf %cst, %2 : f32
    %c0_0 = arith.constant 0 : index
    %c0_1 = arith.constant 0 : index
    %4 = vector.load %arg2[%c0_0, %c0_1] : memref<32x128xf32, #tpu.memory_space<vmem>>, vector<32x128xf32>
    %c1_i32 = arith.constant 1 : i32
    %5 = tpu.dynamic_rotate %4 by %c1_i32 dim 1 : vector<32x128xf32>, i32 -> vector<32x128xf32>
    %c127_i32 = arith.constant 127 : i32
    %6 = tpu.dynamic_rotate %4 by %c127_i32 dim 1 : vector<32x128xf32>, i32 -> vector<32x128xf32>
    %7 = arith.mulf %4, %4 : vector<32x128xf32>
    %8 = arith.mulf %7, %4 : vector<32x128xf32>
    %cst_2 = arith.constant 0.333333343 : f32
    %9 = vector.broadcast %cst_2 : f32 to vector<32x128xf32>
    %10 = arith.mulf %8, %9 : vector<32x128xf32>
    %11 = arith.subf %4, %10 : vector<32x128xf32>
    %12 = arith.addf %11, %6 : vector<32x128xf32>
    %13 = vector.broadcast %2 : f32 to vector<32x128xf32>
    %14 = arith.mulf %13, %12 : vector<32x128xf32>
    %15 = vector.broadcast %0 : f32 to vector<32x128xf32>
    %16 = arith.subf %5, %15 : vector<32x128xf32>
    %17 = vector.broadcast %1 : f32 to vector<32x128xf32>
    %18 = arith.mulf %17, %4 : vector<32x128xf32>
    %19 = arith.addf %16, %18 : vector<32x128xf32>
    %20 = vector.broadcast %3 : f32 to vector<32x128xf32>
    %21 = arith.mulf %20, %19 : vector<32x128xf32>
    %22 = tpu.iota {dimensions = array<i32: 1>} : vector<32x128xi32>
    %c1_i32_3 = arith.constant 1 : i32
    %23 = vector.broadcast %c1_i32_3 : i32 to vector<32x128xi32>
    %24 = arith.andi %22, %23 : vector<32x128xi32>
    %c0_i32 = arith.constant 0 : i32
    %25 = vector.broadcast %c0_i32 : i32 to vector<32x128xi32>
    %26 = arith.cmpi eq, %24, %25 : vector<32x128xi32>
    %27 = arith.select %26, %14, %21 : vector<32x128xi1>, vector<32x128xf32>
    %c0_4 = arith.constant 0 : index
    %c0_5 = arith.constant 0 : index
    %28 = vector.load %arg3[%c0_4, %c0_5] : memref<32x128xf32, #tpu.memory_space<vmem>>, vector<32x128xf32>
    tpu.vector_store %arg3[%c0_4, %c0_5], %27 {strides = array<i32>} : memref<32x128xf32, #tpu.memory_space<vmem>>, vector<32x128xf32>,
    return
  }
  func.func @transform_0(%arg0: i32) -> i32 {
    %c0_i32 = arith.constant 0 : i32
    %c0_i32_0 = arith.constant 0 : i32
    return %c0_i32 : i32
  }
  func.func @transform_1(%arg0: i32) -> (i32, i32) {
    %c0_i32 = arith.constant 0 : i32
    %c0_i32_0 = arith.constant 0 : i32
    return %arg0, %c0_i32 : i32, i32
  }
  func.func @transform_2(%arg0: i32) -> (i32, i32) {
    %c0_i32 = arith.constant 0 : i32
    %c0_i32_0 = arith.constant 0 : i32
    return %arg0, %c0_i32 : i32, i32
  }
}

</mosaic_0001>

<bundles_post_ra>
// kernel: tpu_custom_call.1
= control target key start
LH: loop header
LB: loop body
LE: loop exit
PB: predicated region body
PF: predicated region fallthrough
CT: control target
= control target key end

     0   :  { %7 = vsyncpa [#allocation5], 0  ;;  %s797_s0 = inlined_call_operand.hbm [shape: f32[3], index: 0, kind: input, shape index: {}]   ;;  %s798_s1 = inlined_call_operand.hbm [shape: f32[64,128], index: 1, kind: input, shape index: {}]   ;;  %s799_s2 = inlined_call_operand.hbm [shape: f32[64,128], index: 2, kind: output, shape index: {}]  }
   0x1   :  { %8 = vsyncpa [#allocation3], 0 }
   0x2   :  { %10 = vsyncpa [#allocation3 + $0x1], 0 }
   0x3   :  { %11 = vsyncpa [#allocation4], 0 }
   0x4   :  { %13 = vsyncpa [#allocation4 + $0x1], 0  ;;  %s603_s9 = smov 0   ;;  %s605_s10 = smov 0  }
   0x5   :  { %s607_s11 = smov 0   ;;  %s609_s12 = smov 0  }
   0x6 LB: > { %s624_s13 = sadd.s32 4294967295, %s579_s12   ;;  %s377_s14 = sadd.s32 4294967294, %s579_s12   ;;  %s579_s12 = sphi %s609_s12, %s812_s12   ;;  %s575_s11 = sphi %s607_s11, %s811_s11   ;;  %s571_s10 = sphi %s605_s10, %s810_s10   ;;  %s567_s9 = sphi %s603_s9, %s809_s9  }
   0x7   : > { %s628_s15 = sadd.s32 1, %s579_s12   ;;  %s47_s16 = sadd.s32 1, %s575_s11 }
   0x8   : > { %s44_s17 = ssub.s32 %s579_s12, %s628_s15  ;;  %p54_p0 = scmp.ne.s32.totalorder %s575_s11, %s571_s10 }
   0x9   : > { %p45_p1 = scmp.eq.s32.totalorder %s44_s17, 0  ;;  %p55_p2 = scmp.eq.s32.totalorder %s579_s12, 0 }
   0xa   : > { %p60_p3 = scmp.ne.s32.totalorder %s571_s10, %s567_s9  ;;  %p61_p4 = scmp.eq.s32.totalorder %s624_s13, 0 }
   0xb   : > { %s640_s18 = scalar_select %p45_p1, %s575_s11, %s47_s16  }
   0xc   : > { %p642_p5 = por %p55_p2, %p54_p0  ;;  %p648_p6 = por %p61_p4, %p60_p3 }
   0xd   : > { %p84_p7 = scmp.eq.s32.totalorder %s624_s13, 1  ;;  %p90_p8 = scmp.eq.s32.totalorder %s377_s14, 1 }
   0xe   : > { %p378_p9 = scmp.ge.s32.totalorder %s579_s12, 1  ;;  %p97_p10 = scmp.lt.s32.totalorder %s579_s12, 3 }
   0xf   : > { %p655_p11 = por %p84_p7, %p54_p0  ;;  %p659_p12 = por %p90_p8, %p60_p3 }
  0x10   : > { %p663_p13 = pnand %p378_p9, %p97_p10  ;;  %s109_s26 = sshll.u32 %s797_s0, 4  ;;  %s110_s26 = int_to_ptr.hbm [resolvable:$true] %s109_s26 }
  0x11   : > { %p420_p2 = scmp.lt.s32.totalorder %s579_s12, 2  ;;  %s120_s27 = sand.u32 1, %s575_s11  }
  0x12   : > { %p407_p1 = pneg %p663_p13  ;;  %s381_s29 = sshll.u32 %s120_s27, 5 }
  0x13   : > { %p679_p3 = pnand %p420_p2, %p642_p5  ;;  %s581_s30 = smov [#allocation2]  }
  0x14   : > { %p408_p7 = pnand %p407_p1, %p61_p4  ;;  %s395_s3 = sshll.u32 %s579_s12, 5 }
  0x15   : > { %s124_s4 = scalar_lea.vmem [#allocation6], %s381_s29  ;;  %s129_s8 = scalar_lea.hbm %s798_s1, %s395_s3 }
  0x16   : > { %410 = dma.hbm_to_smem (!%p408_p7), %s110_s26, 16, %s581_s30, [#allocation5]  }
  0x17   : > { %s132_s5 = sshll.u32 %s124_s4, 4  ;;  %s130_s14 = sshll.u32 %s129_s8, 4  ;;  %s133_s5 = int_to_ptr.vmem [resolvable:$true] %s132_s5  ;;  %s131_s14 = int_to_ptr.hbm [resolvable:$true] %s130_s14 }
  0x18   : > { %s121_s16 = scalar_lea.sflag [#allocation3], %s120_s27  ;;  %s479_s17 = sshra.s32 %s131_s14, 4  ;;  %s480_s17 = int_to_ptr.hbm [resolvable:$true] %s479_s17 }
  0x19   : > { %s481_s19 = scalar_lea.hbm %s480_s17, 32  ;;  %p483_p8 = pneg %p679_p3 }
  0x1a   : > { %p482_p5 = scmp.ne.s32.totalorder %s480_s17, %s481_s19  ;;  %s486_s26 = scalar_lea.hbm %s798_s1, 64 }
  0x1b   : > { %p487_p1 = scmp.lt.s32.totalorder %s480_s17, %s798_s1  ;;  %p488_p2 = scmp.lt.s32.totalorder %s486_s26, %s481_s19 }
  0x1c   : > { %p484_p9 = pnand %p483_p8, %p482_p5 }
  0x1d   : > { %p489_p7 = por %p488_p2, %p487_p1 }
  0x1e   : > { %p485_p10 = pneg %p484_p9 }
  0x20   : > { %p490_p0 = pnand %p489_p7, %p485_p10 }
  0x22   : > { %493 = shalt.err (!%p490_p0)
}
  0x23   : > { %s582_s27 = smov 128   ;;  %s583_s3 = smov 8  }
  0x24   : > { %414 = dma.hbm_to_vmem [thread:$0]  (!%p679_p3), %s131_s14, 512, %s133_s5, %s121_s16, %s582_s27, %s582_s27, %s583_s3  }
  0x25   : > { %144 = sbr.rel (%p663_p13) target bundleno = 191 (0xbf), region = 28 }
  0x2a   : > { %554 = dma.done.wait (%p61_p4), [#allocation5], 16  }
  0x2b   : > { %556 = vsyncadd (%p61_p4), [#allocation5], 4294967280  ;;  %s704_s4 = sand.u32 1, %s571_s10  }
  0x2c   : > { %s386_s6 = sshll.u32 %s704_s4, 5  ;;  %s152_s7 = scalar_lea.sflag [#allocation3], %s704_s4 }
  0x2d   : > { %s155_s28 = scalar_lea.vmem [#allocation6], %s386_s6 }
  0x2e   : > { %558 = dma.done.wait (%p648_p6), %s152_s7, 512  }
  0x2f   : > { %560 = vsyncadd (%p648_p6), %s152_s7, 4294966784 }
  0x30   : > { %161 = sfence }
  0x31   : > { %v714_v0 = vld [vmem:[%s155_s28 + $0x10] sm:$0xff]  ;;  %v200_v1 = vld [vmem:[%s155_s28] sm:$0xff]  ;;  %s584_s23 = smov 1   ;;  %s389_s5 = sld [smem:[#allocation2 + $0x2]]  ;;  %v717_v2 = vld [vmem:[%s155_s28 + $0x18] sm:$0xff]  ;;  %v264_v19 = vlaneseq }
  0x32   : > { %208 = vrot.lane.b32.xlu1 %v714_v0, %s584_s23  ;;  %204 = vrot.lane.b32.xlu0 %v200_v1, %s584_s23  ;;  %s585_s8 = smov 127   ;;  %v201_v3 = vld [vmem:[%s155_s28 + $0x8] sm:$0xff]  ;;  %v220_v15 = vmul.f32 %v200_v1, %v200_v1  ;;  %s388_s20 = sld [smem:[#allocation2 + $0x1]]  ;;  %v223_v33 = vmul.f32 %v717_v2, %v717_v2  ;;  %v222_v34 = vmul.f32 %v714_v0, %v714_v0 }
  0x33   : > { %212 = vrot.lane.b32.xlu2 %v200_v1, %s585_s8  ;;  %s180_s14 = sld [smem:[#allocation2]]  ;;  %v221_v18 = vmul.f32 %v201_v3, %v201_v3  ;;  %v265_v24 = vand.u32 127, %v264_v19  ;;  %s744_s19 = scalar_lea.vmem [#allocation7], %s386_s6 }
  0x34   : > { %v224_v16 = vmul.f32 %v220_v15, %v200_v1  ;;  %v227_v42 = vmul.f32 %v223_v33, %v717_v2  ;;  %v226_v43 = vmul.f32 %v222_v34, %v714_v0  ;;  %s396_s24 = sshll.u32 %s624_s13, 5  ;;  %s289_s13 = sshll.u32 %s744_s19, 4  ;;  %s290_s13 = int_to_ptr.vmem [resolvable:$true] %s289_s13 }
  0x35   : > { %v225_v22 = vmul.f32 %v221_v18, %v201_v3  ;;  %v266_v31 = vand.u32 1, %v265_v24  ;;  %s288_s29 = scalar_lea.hbm %s799_s2, %s396_s24  ;;  %s277_s27 = scalar_lea.sflag [#allocation4], %s704_s4 }
  0x36   : > { %v228_v17 = vmul.f32 0.33333334, %v224_v16  ;;  %v231_v50 = vmul.f32 0.33333334, %v227_v42  ;;  %v230_v51 = vmul.f32 0.33333334, %v226_v43 }
  0x37   : > { %v719_v4 = vstv %s389_s5  ;;  %v229_v28 = vmul.f32 0.33333334, %v225_v22  ;;  %vm734_vm4 = vcmp.eq.s32.totalorder %v266_v31, 0  ;;  %s291_s30 = sshll.u32 %s288_s29, 4  ;;  %s292_s30 = int_to_ptr.hbm [resolvable:$true] %s291_s30 }
  0x38   : > { %462 = vrcp.f32 %v719_v4  ;;  %v195_v7 = vand.u32 2147483648, %v719_v4  ;;  %vm189_vm0 = vweird.f32 %v719_v4  ;;  %v193_v9 = vand.u32 2147483647, %v719_v4  ;;  %s523_s3 = sshra.s32 %s292_s30, 4  ;;  %s524_s3 = int_to_ptr.hbm [resolvable:$true] %s523_s3 }
  0x39   : > { %v232_v21 = vsub.f32 %v200_v1, %v228_v17  ;;  %v250_v23 = vstv %s388_s20  ;;  %v245_v25 = vstv %s180_s14  ;;  %v233_v38 = vsub.f32 %v201_v3, %v229_v28  ;;  %s525_s6 = scalar_lea.hbm %s524_s3, 32  ;;  %p530_p0 = scmp.lt.s32.totalorder %s524_s3, %s799_s2 }
  0x3a   : > { %210 = vrot.lane.b32.xlu1 %v717_v2, %s584_s23  ;;  %206 = vrot.lane.b32.xlu0 %v201_v3, %s584_s23  ;;  %v196_v11 = vor.u32 1.1754944e-38, %v195_v7  ;;  %vm194_vm3 = vcmp.eq.f32.partialorder %v193_v9, 8.507059e+37  ;;  %v251_v26 = vmul.f32 %v250_v23, %v200_v1  ;;  %v252_v45 = vmul.f32 %v250_v23, %v201_v3  ;;  %p526_p4 = scmp.ne.s32.totalorder %s524_s3, %s525_s6  ;;  %s529_s23 = scalar_lea.hbm %s799_s2, 64 }
  0x3b   : > { %214 = vrot.lane.b32.xlu2 %v201_v3, %s585_s8  ;;  %v253_v52 = vmul.f32 %v250_v23, %v714_v0  ;;  %v254_v53 = vmul.f32 %v250_v23, %v717_v2  ;;  %v235_v59 = vsub.f32 %v717_v2, %v231_v50  ;;  %v234_v60 = vsub.f32 %v714_v0, %v230_v51  ;;  %p531_p3 = scmp.lt.s32.totalorder %s529_s23, %s525_s6 }
  0x3c   : > { %p527_p6 = pnand %p526_p4, %p655_p11 }
  0x3d   : > { %p532_p5 = por %p531_p3, %p530_p0 }
  0x3e   : > { %v463_v5 = vpop.eup %462  ;;  %p528_p13 = pneg %p527_p6 }
  0x3f   : > { %v185_v6 = vmul.f32 %v463_v5, %v719_v4  ;;  %vm190_vm1 = vweird.f32 %v463_v5 }
  0x40   : > { %vm191_vm2 = vmor %vm189_vm0, %vm190_vm1  ;;  %p533_p8 = pnand %p532_p5, %p528_p13 }
  0x41   : > { %v186_v8 = vsub.f32 1.0, %v185_v6 }
  0x42   : > { %218 = vrot.lane.b32.xlu1 %v717_v2, %s585_s8  ;;  %216 = vrot.lane.b32.xlu0 %v714_v0, %s585_s8 }
  0x43   : > { %v187_v10 = vmul.f32 %v463_v5, %v186_v8 }
  0x45   : > { %v188_v12 = vadd.f32 %v463_v5, %v187_v10 }
  0x47   : > { %v192_v13 = vsel %vm191_vm2, %v463_v5, %v188_v12 }
  0x48   : > { %v197_v14 = vsel %vm194_vm3, %v196_v11, %v192_v13 }
  0x49   : > { %397 = vpush %v197_v14 }
  0x7a   : > { %s398_s16 = spop %397 }
  0x7b   : > { %s199_s17 = smul.f32 -1.0, %s398_s16 }
  0x7d   : > { %v259_v35 = vstv %s199_s17 }
  0x8d   : > { %v213_v20 = vpop.permute.xlu2 %212 }
  0x8e   : > { %v236_v27 = vadd.f32 %v232_v21, %v213_v20 }
  0x90   : > { %v241_v37 = vmul.f32 %v236_v27, %v719_v4 }
  0x95   : > { %v215_v40 = vpop.permute.xlu2 %214 }
  0x96   : > { %v237_v46 = vadd.f32 %v233_v38, %v215_v40 }
  0x98   : > { %v242_v57 = vmul.f32 %v237_v46, %v719_v4 }
  0xa4   : > { %v209_v29 = vpop.permute.xlu1 %208  ;;  %v205_v30 = vpop.permute.xlu0 %204 }
  0xa5   : > { %v246_v32 = vsub.f32 %v205_v30, %v245_v25  ;;  %v248_v54 = vsub.f32 %v209_v29, %v245_v25 }
  0xa7   : > { %v255_v36 = vadd.f32 %v251_v26, %v246_v32  ;;  %v257_v61 = vadd.f32 %v253_v52, %v248_v54 }
  0xa9   : > { %v260_v41 = vmul.f32 %v259_v35, %v255_v36  ;;  %v262_v0 = vmul.f32 %v259_v35, %v257_v61 }
  0xab   : > { %v268_v44 = vsel %vm734_vm4, %v241_v37, %v260_v41 }
  0xac   : > { %272 = vst [vmem:[%s744_s19] sm:$0xff] %v268_v44  ;;  %v211_v47 = vpop.permute.xlu1 %210  ;;  %v207_v48 = vpop.permute.xlu0 %206 }
  0xad   : > { %v247_v49 = vsub.f32 %v207_v48, %v245_v25  ;;  %v249_v55 = vsub.f32 %v211_v47, %v245_v25 }
  0xaf   : > { %v256_v56 = vadd.f32 %v252_v45, %v247_v49  ;;  %v258_v62 = vadd.f32 %v254_v53, %v249_v55 }
  0xb1   : > { %v261_v58 = vmul.f32 %v259_v35, %v256_v56  ;;  %v263_v2 = vmul.f32 %v259_v35, %v258_v62 }
  0xb3   : > { %v269_v63 = vsel %vm734_vm4, %v242_v57, %v261_v58 }
  0xb4   : > { %273 = vst [vmem:[%s744_s19 + $0x8] sm:$0xff] %v269_v63  ;;  %v219_v1 = vpop.permute.xlu1 %218  ;;  %v217_v3 = vpop.permute.xlu0 %216 }
  0xb5   : > { %v239_v5 = vadd.f32 %v235_v59, %v219_v1  ;;  %v238_v6 = vadd.f32 %v234_v60, %v217_v3 }
  0xb7   : > { %v244_v7 = vmul.f32 %v239_v5, %v719_v4  ;;  %v243_v8 = vmul.f32 %v238_v6, %v719_v4 }
  0xb9   : > { %v271_v9 = vsel %vm734_vm4, %v244_v7, %v263_v2  ;;  %v270_v10 = vsel %vm734_vm4, %v243_v8, %v262_v0 }
  0xba   : > { %275 = vst [vmem:[%s744_s19 + $0x18] sm:$0xff] %v271_v9 }
  0xbb   : > { %274 = vst [vmem:[%s744_s19 + $0x10] sm:$0xff] %v270_v10 }
  0xbc   : > { %536 = shalt.err (!%p533_p8)
}
  0xbd   : > { %s586_s4 = smov 128   ;;  %s587_s20 = smov 8  }
  0xbe   : > { %405 = dma.vmem_to_hbm [thread:$0]  (%p655_p11), %s290_s13, 512, %s292_s30, %s277_s27, %s586_s4, %s586_s4, %s587_s20  }
  0xbf PF: > { %s306_s14 = sand.u32 1, %s567_s9   ;;  %p808_p9 = scmp.ge.s32.totalorder %s579_s12, 2 }
  0xc0   : > { %s307_s16 = scalar_lea.sflag [#allocation4], %s306_s14 }
  0xc1   : > { %p416_p10 = pnand %p808_p9, %p659_p12 }
  0xc3   : > { %p417_p1 = pneg %p416_p10 }
  0xc5   : > { %562 = dma.done.wait (%p417_p1), %s307_s16, 512  }
  0xc6   : > { %564 = vsyncadd (%p417_p1), %s307_s16, 4294966784  ;;  %p16_p2 = scmp.ge.s32.totalorder %s628_s15, 4   ;;  %s809_s9 = smov %s571_s10 }
  0xc7   : > { %s810_s10 = smov %s575_s11  ;;  %s811_s11 = smov %s640_s18 }
  0xc8   : > { %s812_s12 = smov %s628_s15  ;;  %18 = sbr.rel (!%p16_p2) target bundleno = 6 (0x6), region = 78 }
  0xcd   :  { %313 = vsyncpa [#allocation3], 1 }
  0xce   :  { %315 = vsyncpa [#allocation3 + $0x1], 1 }
  0xcf   :  { %316 = vsyncpa [#allocation4], 1 }
  0xd0   :  { %318 = vsyncpa [#allocation4 + $0x1], 1 }
  0xd1   :  { %319 = vsyncpa [#allocation5], 1 }
  0xd2   :  { %321 = vsyncpa [#allocation5 + $0x1], 1 }

</bundles_post_ra>
